<compile_context>
chip_gen: v7x
topology: tpu7x:2x2x1
jax: 0.10.0
libtpu: 0.0.40
codegen_flags: <defaults>
</compile_context>

<pallas_src>
import jax
import jax.numpy as jnp
from jax.experimental import pallas as pl
from jax.experimental.pallas import tpu as pltpu

NEG_SLOPE = 0.01  # nn.LeakyReLU default negative_slope


def _leaky_relu(x):
    # max(x, a*x) == LeakyReLU_a(x) for 0 < a < 1 (2 VALU ops vs 3).
    return jnp.maximum(x, NEG_SLOPE * x)


def _round_up(x, m):
    return (x + m - 1) // m * m


def _make_kernel(fc1, fc2, fc3):
    def kernel(x_ref, w1_ref, w23_ref, b123_ref, w4_ref, b4_ref, out_ref):
        f32 = jnp.float32
        bf16 = jnp.bfloat16

        # Layer 1: bf16 x bf16 MXU matmul, f32 accumulation.
        x = x_ref[...].astype(bf16)                                  # (TB, D)
        h = jnp.dot(x, w1_ref[...], preferred_element_type=f32)      # (TB, fc1) f32
        h = _leaky_relu(h + b123_ref[:, :fc1])

        # Layer 2: static lane-aligned slice of the packed w2|w3 weights
        # (free because fc1/fc2/fc3 are multiples of 128).
        h = jnp.dot(h.astype(bf16), w23_ref[:, :fc2],
                    preferred_element_type=f32)
        h = _leaky_relu(h + b123_ref[:, fc1:fc1 + fc2])

        # Layer 3
        h = jnp.dot(h.astype(bf16), w23_ref[:, fc2:fc2 + fc3],
                    preferred_element_type=f32)
        h = _leaky_relu(h + b123_ref[:, fc1 + fc2:fc1 + fc2 + fc3])

        # Final Linear(fc3 -> 1): VPU multiply + XLU lane reduction (f32).
        w4 = w4_ref[...].astype(f32)                                 # (1, fc3)
        v = jnp.sum(h * w4, axis=-1, keepdims=True) + b4_ref[...]
        out_ref[...] = v.astype(out_ref.dtype)

    return kernel


def critic_forward(state, params, *, block_b=2048):
    """state: [B, input_dims] float32 -> value: [B, 1] float32."""
    w1, w23, b123, w4, b4 = (params["w1"], params["w23"], params["b123"],
                             params["w4"], params["b4"])
    fc1, fc2, fc3 = params["dims"]
    B, D = state.shape

    # Batch tile: multiple of 8 sublanes, large to amortize the ~0.35us
    # per-grid-step overhead, but clamped so the "parallel" batch axis keeps
    # >= 4 steps (v7x megacore sharding / load balance).
    TB = min(_round_up(block_b, 8), _round_up(pl.cdiv(B, 4), 8))
    grid = (pl.cdiv(B, TB),)  # partial tail block: write is masked, rows are
                              # independent, so no whole-array padding needed.

    return pl.pallas_call(
        _make_kernel(fc1, fc2, fc3),
        out_shape=jax.ShapeDtypeStruct((B, 1), jnp.float32),
        grid=grid,
        in_specs=[
            pl.BlockSpec((TB, D), lambda i: (i, 0)),               # x tile (pipelined)
            pl.BlockSpec((D, fc1), lambda i: (0, 0)),              # w1     (resident)
            pl.BlockSpec((fc1, fc2 + fc3), lambda i: (0, 0)),      # w2|w3  (resident)
            pl.BlockSpec((1, fc1 + fc2 + fc3), lambda i: (0, 0)),  # b1|b2|b3
            pl.BlockSpec((1, fc3), lambda i: (0, 0)),              # w4 row
            pl.BlockSpec((1, 1), lambda i: (0, 0)),                # b4
        ],
        out_specs=pl.BlockSpec((TB, 1), lambda i: (i, 0)),
        compiler_params=pltpu.CompilerParams(
            dimension_semantics=("parallel",),
            vmem_limit_bytes=32 * 1024 * 1024),
    )(state, w1, w23, b123, w4, b4)


def init_params(key, input_dims, fc1=256, fc2=256, fc3=256,
                weight_dtype=jnp.bfloat16):
    """PyTorch nn.Linear-style init U(-1/sqrt(fan_in), 1/sqrt(fan_in)).

    Weights are stored as (in_features, out_features) so the kernel computes
    y = x @ W + b (== PyTorch's x @ W.T + b). Hidden weights/biases are packed
    side-by-side (fewer DMAs); weights kept in bf16 (MXU operands + half the
    HBM traffic), biases stay f32.
    """
    assert fc1 == fc2, "w2|w3 packing assumes fc1 == fc2 (module default: 256)"
    assert fc1 % 128 == 0 and fc2 % 128 == 0 and fc3 % 128 == 0, \
        "static lane slices of the packed weights require 128-aligned widths"

    def linear(key, fan_in, fan_out):
        kw, kb = jax.random.split(key)
        bound = 1.0 / jnp.sqrt(jnp.float32(fan_in))
        w = jax.random.uniform(kw, (fan_in, fan_out), jnp.float32, -bound, bound)
        b = jax.random.uniform(kb, (1, fan_out), jnp.float32, -bound, bound)
        return w, b

    k1, k2, k3, k4 = jax.random.split(key, 4)
    w1, b1 = linear(k1, input_dims, fc1)
    w2, b2 = linear(k2, fc1, fc2)
    w3, b3 = linear(k3, fc2, fc3)
    w4, b4 = linear(k4, fc3, 1)

    return {
        "w1": w1.astype(weight_dtype),
        "w23": jnp.concatenate([w2, w3], axis=1).astype(weight_dtype),
        "b123": jnp.concatenate([b1, b2, b3], axis=1),      # f32
        "w4": w4.reshape(1, fc3).astype(weight_dtype),      # row vector
        "b4": b4.reshape(1, 1),                             # f32
        "dims": (fc1, fc2, fc3),
    }


def critic_ref(state, params):
    """Pure-JAX reference with the same numerics: bf16 matmul operands,
    f32 accumulation, f32 bias/activation epilogues."""
    fc1, fc2, fc3 = params["dims"]
    f32, bf16 = jnp.float32, jnp.bfloat16
    w1, w23 = params["w1"], params["w23"]
    b = params["b123"]
    w4 = params["w4"].astype(f32)
    b4 = params["b4"]

    h = _leaky_relu(jnp.dot(state.astype(bf16), w1,
                            preferred_element_type=f32) + b[:, :fc1])
    h = _leaky_relu(jnp.dot(h.astype(bf16), w23[:, :fc2],
                            preferred_element_type=f32) + b[:, fc1:fc1 + fc2])
    h = _leaky_relu(jnp.dot(h.astype(bf16), w23[:, fc2:fc2 + fc3],
                            preferred_element_type=f32)
                    + b[:, fc1 + fc2:fc1 + fc2 + fc3])
    return jnp.sum(h * w4, axis=-1, keepdims=True) + b4


if __name__ == "__main__":
    key = jax.random.PRNGKey(0)
    k_params, k_state1, k_state2 = jax.random.split(key, 3)

    input_dims = 8  # small observation vector (*input_dims in the module)
    params = init_params(k_params, input_dims)

    # Case 1: tiny batch (single grid step; block == whole batch).
    state = jax.random.normal(k_state1, (8, input_dims), jnp.float32)
    value = jax.block_until_ready(critic_forward(state, params))
    ref = critic_ref(state, params)
    assert value.shape == (8, 1)
    assert jnp.allclose(value, ref, atol=2e-3, rtol=2e-3), "mismatch (B=8)"

    # Case 2: multi-step batch grid with a partial tail block (exercises the
    # >=4-step clamp, pipelining, and masked tail writeback).
    state2 = jax.random.normal(k_state2, (300, input_dims), jnp.float32)
    value2 = jax.block_until_ready(critic_forward(state2, params, block_b=128))
    ref2 = critic_ref(state2, params)
    assert value2.shape == (300, 1)
    assert jnp.allclose(value2, ref2, atol=2e-3, rtol=2e-3), "mismatch (B=300)"

    print("KERNEL_OK")
</pallas_src>

<mosaic_0001>
module attributes {stable_mosaic.version = 11 : i64} {
  func.func @kernel(%arg0: i32, %arg1: memref<8x8xf32, #tpu.memory_space<vmem>>, %arg2: memref<8x256xbf16, #tpu.memory_space<vmem>>, %arg3: memref<256x512xbf16, #tpu.memory_space<vmem>>, %arg4: memref<1x768xf32, #tpu.memory_space<vmem>>, %arg5: memref<1x256xbf16, #tpu.memory_space<vmem>>, %arg6: memref<1x1xf32, #tpu.memory_space<vmem>>, %arg7: memref<8x1xf32, #tpu.memory_space<vmem>>) attributes {dimension_semantics = [#tpu.dimension_semantics<parallel>], iteration_bounds = array<i64: 1>, scalar_prefetch = 0 : i64, scratch_operands = 0 : i64, tpu.core_type = #tpu.core_type<tc>, window_params = [{transform_indices = @transform_0, window_bounds = array<i64: 8, 8>}, {pipeline_mode = #tpu.pipeline_mode<synchronous>, transform_indices = @transform_1, window_bounds = array<i64: 8, 256>}, {pipeline_mode = #tpu.pipeline_mode<synchronous>, transform_indices = @transform_2, window_bounds = array<i64: 256, 512>}, {pipeline_mode = #tpu.pipeline_mode<synchronous>, transform_indices = @transform_3, window_bounds = array<i64: 1, 768>}, {pipeline_mode = #tpu.pipeline_mode<synchronous>, transform_indices = @transform_4, window_bounds = array<i64: 1, 256>}, {pipeline_mode = #tpu.pipeline_mode<synchronous>, transform_indices = @transform_5, window_bounds = array<i64: 1, 1>}, {transform_indices = @transform_6, window_bounds = array<i64: 8, 1>}]} {
    %c0 = arith.constant 0 : index
    %c0_0 = arith.constant 0 : index
    %0 = vector.load %arg1[%c0, %c0_0] : memref<8x8xf32, #tpu.memory_space<vmem>>, vector<8x8xf32>
    %1 = arith.truncf %0 : vector<8x8xf32> to vector<8x8xbf16>
    %c0_1 = arith.constant 0 : index
    %c0_2 = arith.constant 0 : index
    %2 = vector.load %arg2[%c0_1, %c0_2] : memref<8x256xbf16, #tpu.memory_space<vmem>>, vector<8x256xbf16>
    %cst = arith.constant dense<0.000000e+00> : vector<8x256xf32>
    %3 = tpu.matmul %1, %2, %cst {dimension_numbers = #tpu.dot_dimension_numbers<[1], [0], [0], [1], [0, 0, 1, 1], [], []>} : vector<8x8xbf16>, vector<8x256xbf16>, vector<8x256xf32> -> vector<8x256xf32>
    %c0_3 = arith.constant 0 : index
    %c0_4 = arith.constant 0 : index
    %4 = vector.load %arg4[%c0_3, %c0_4] : memref<1x768xf32, #tpu.memory_space<vmem>>, vector<1x256xf32>
    %5 = vector.broadcast %4 : vector<1x256xf32> to vector<8x256xf32>
    %6 = arith.addf %3, %5 : vector<8x256xf32>
    %cst_5 = arith.constant 0.00999999977 : f32
    %7 = vector.broadcast %cst_5 : f32 to vector<8x256xf32>
    %8 = arith.mulf %7, %6 : vector<8x256xf32>
    %9 = arith.maximumf %6, %8 : vector<8x256xf32>
    %10 = arith.truncf %9 : vector<8x256xf32> to vector<8x256xbf16>
    %c0_6 = arith.constant 0 : index
    %c0_7 = arith.constant 0 : index
    %11 = vector.load %arg3[%c0_6, %c0_7] : memref<256x512xbf16, #tpu.memory_space<vmem>>, vector<256x256xbf16>
    %cst_8 = arith.constant dense<0.000000e+00> : vector<8x256xf32>
    %12 = tpu.matmul %10, %11, %cst_8 {dimension_numbers = #tpu.dot_dimension_numbers<[1], [0], [0], [1], [0, 0, 1, 1], [], []>} : vector<8x256xbf16>, vector<256x256xbf16>, vector<8x256xf32> -> vector<8x256xf32>
    %c0_9 = arith.constant 0 : index
    %c256 = arith.constant 256 : index
    %13 = vector.load %arg4[%c0_9, %c256] : memref<1x768xf32, #tpu.memory_space<vmem>>, vector<1x256xf32>
    %14 = vector.broadcast %13 : vector<1x256xf32> to vector<8x256xf32>
    %15 = arith.addf %12, %14 : vector<8x256xf32>
    %cst_10 = arith.constant 0.00999999977 : f32
    %16 = vector.broadcast %cst_10 : f32 to vector<8x256xf32>
    %17 = arith.mulf %16, %15 : vector<8x256xf32>
    %18 = arith.maximumf %15, %17 : vector<8x256xf32>
    %19 = arith.truncf %18 : vector<8x256xf32> to vector<8x256xbf16>
    %c0_11 = arith.constant 0 : index
    %c256_12 = arith.constant 256 : index
    %20 = vector.load %arg3[%c0_11, %c256_12] : memref<256x512xbf16, #tpu.memory_space<vmem>>, vector<256x256xbf16>
    %cst_13 = arith.constant dense<0.000000e+00> : vector<8x256xf32>
    %21 = tpu.matmul %19, %20, %cst_13 {dimension_numbers = #tpu.dot_dimension_numbers<[1], [0], [0], [1], [0, 0, 1, 1], [], []>} : vector<8x256xbf16>, vector<256x256xbf16>, vector<8x256xf32> -> vector<8x256xf32>
    %c0_14 = arith.constant 0 : index
    %c512 = arith.constant 512 : index
    %22 = vector.load %arg4[%c0_14, %c512] : memref<1x768xf32, #tpu.memory_space<vmem>>, vector<1x256xf32>
    %23 = vector.broadcast %22 : vector<1x256xf32> to vector<8x256xf32>
    %24 = arith.addf %21, %23 : vector<8x256xf32>
    %cst_15 = arith.constant 0.00999999977 : f32
    %25 = vector.broadcast %cst_15 : f32 to vector<8x256xf32>
    %26 = arith.mulf %25, %24 : vector<8x256xf32>
    %27 = arith.maximumf %24, %26 : vector<8x256xf32>
    %c0_16 = arith.constant 0 : index
    %c0_17 = arith.constant 0 : index
    %28 = vector.load %arg5[%c0_16, %c0_17] : memref<1x256xbf16, #tpu.memory_space<vmem>>, vector<1x256xbf16>
    %29 = arith.extf %28 : vector<1x256xbf16> to vector<1x256xf32>
    %30 = vector.broadcast %29 : vector<1x256xf32> to vector<8x256xf32>
    %31 = arith.mulf %27, %30 : vector<8x256xf32>
    %cst_18 = arith.constant dense<0.000000e+00> : vector<8xf32>
    %32 = vector.multi_reduction <add>, %31, %cst_18 [1] : vector<8x256xf32> to vector<8xf32>
    %33 = vector.shape_cast %32 : vector<8xf32> to vector<8x1xf32>
    %c0_19 = arith.constant 0 : index
    %c0_20 = arith.constant 0 : index
    %34 = vector.load %arg6[%c0_19, %c0_20] : memref<1x1xf32, #tpu.memory_space<vmem>>, vector<1x1xf32>
    %35 = vector.broadcast %34 : vector<1x1xf32> to vector<8x1xf32>
    %36 = arith.addf %33, %35 : vector<8x1xf32>
    %c0_21 = arith.constant 0 : index
    %c0_22 = arith.constant 0 : index
    %37 = vector.load %arg7[%c0_21, %c0_22] : memref<8x1xf32, #tpu.memory_space<vmem>>, vector<8x1xf32>
    tpu.vector_store %arg7[%c0_21, %c0_22], %36 {strides = array<i32>} : memref<8x1xf32, #tpu.memory_space<vmem>>, vector<8x1xf32>,
    return
  }
  func.func @transform_0(%arg0: i32) -> (i32, i32) {
    %c0_i32 = arith.constant 0 : i32
    %c0_i32_0 = arith.constant 0 : i32
    return %arg0, %c0_i32 : i32, i32
  }
  func.func @transform_1(%arg0: i32) -> (i32, i32) {
    %c0_i32 = arith.constant 0 : i32
    %c0_i32_0 = arith.constant 0 : i32
    %c0_i32_1 = arith.constant 0 : i32
    return %c0_i32, %c0_i32_0 : i32, i32
  }
  func.func @transform_2(%arg0: i32) -> (i32, i32) {
    %c0_i32 = arith.constant 0 : i32
    %c0_i32_0 = arith.constant 0 : i32
    %c0_i32_1 = arith.constant 0 : i32
    return %c0_i32, %c0_i32_0 : i32, i32
  }
  func.func @transform_3(%arg0: i32) -> (i32, i32) {
    %c0_i32 = arith.constant 0 : i32
    %c0_i32_0 = arith.constant 0 : i32
    %c0_i32_1 = arith.constant 0 : i32
    return %c0_i32, %c0_i32_0 : i32, i32
  }
  func.func @transform_4(%arg0: i32) -> (i32, i32) {
    %c0_i32 = arith.constant 0 : i32
    %c0_i32_0 = arith.constant 0 : i32
    %c0_i32_1 = arith.constant 0 : i32
    return %c0_i32, %c0_i32_0 : i32, i32
  }
  func.func @transform_5(%arg0: i32) -> (i32, i32) {
    %c0_i32 = arith.constant 0 : i32
    %c0_i32_0 = arith.constant 0 : i32
    %c0_i32_1 = arith.constant 0 : i32
    return %c0_i32, %c0_i32_0 : i32, i32
  }
  func.func @transform_6(%arg0: i32) -> (i32, i32) {
    %c0_i32 = arith.constant 0 : i32
    %c0_i32_0 = arith.constant 0 : i32
    return %arg0, %c0_i32 : i32, i32
  }
}

</mosaic_0001>

<bundles_post_ra>
// kernel: tpu_custom_call.1
= control target key start
LH: loop header
LB: loop body
LE: loop exit
PB: predicated region body
PF: predicated region fallthrough
CT: control target
= control target key end

     0   :  { %s1029_s0 = inlined_call_operand.hbm [shape: f32[8,8], index: 0, kind: input, shape index: {}]   ;;  %s1030_s1 = inlined_call_operand.hbm [shape: bf16[8,256], index: 1, kind: input, shape index: {}]   ;;  %s1031_s2 = inlined_call_operand.hbm [shape: bf16[256,512], index: 2, kind: input, shape index: {}]   ;;  %s1032_s3 = inlined_call_operand.vmem [shape: f32[1,768], index: 3, kind: input, shape index: {}]   ;;  %s1033_s4 = inlined_call_operand.vmem [shape: bf16[1,256], index: 4, kind: input, shape index: {}]   ;;  %s1034_s5 = inlined_call_operand.<no memory space> [shape: f32[1,1], index: 5, kind: input, shape index: {}]   ;;  %s1035_s6 = inlined_call_operand.vmem [shape: f32[8,1], index: 6, kind: output, shape index: {}]  }
   0x1   :  { %v11_v0 = vstv %s1034_s5 }
   0x2   :  { %12 = vst [vmem:[#allocation2] sm:$0x1] %v11_v0 }
   0x3   :  { %13 = vsyncpa [#allocation4], 0 }
   0x4   :  { %14 = vsyncpa [#allocation6], 0  ;;  %s926_s23 = smov [#allocation5]   ;;  %s927_s25 = smov [#allocation3]  }
   0x5   :  { %s31_s24 = sshll.u32 %s926_s23, 4  ;;  %s21_s26 = sshll.u32 %s927_s25, 4  ;;  %s32_s24 = int_to_ptr.vmem [resolvable:$true] %s31_s24  ;;  %s22_s26 = int_to_ptr.vmem [resolvable:$true] %s21_s26 }
   0x6   :  { %s856_s29 = scalar_lea.hbm %s1030_s1, 128 }
   0x7   :  { %p857_p0 = scmp.ne.s32.totalorder %s1030_s1, %s856_s29  ;;  %p860_p1 = scmp.lt.u32.totalorder %s856_s29, %s1030_s1 }
   0x9   :  { %p862_p2 = pnand %p860_p1, %p857_p0 }
   0xb   :  { %865 = shalt.err (!%p862_p2)
}
   0xc   :  { %s866_s5 = scalar_lea.vmem %s32_s24, 128  ;;  %p871_p4 = scmp.lt.s32.totalorder %s32_s24, %s32_s24 }
   0xd   :  { %p867_p3 = scmp.ne.s32.totalorder %s32_s24, %s866_s5  ;;  %p872_p5 = scmp.lt.s32.totalorder %s866_s5, %s866_s5 }
   0xf   :  { %p873_p6 = por %p872_p5, %p871_p4 }
  0x11   :  { %p874_p7 = pnand %p873_p6, %p867_p3 }
  0x13   :  { %877 = shalt.err (!%p874_p7)
}
  0x14   :  { %34 = dma.hbm_to_vmem [thread:$0]  %s1030_s1, 128, %s32_s24, [#allocation6]  }
  0x15   :  { %s878_s14 = scalar_lea.hbm %s1029_s0, 128 }
  0x16   :  { %p879_p8 = scmp.ne.s32.totalorder %s1029_s0, %s878_s14  ;;  %p882_p9 = scmp.lt.u32.totalorder %s878_s14, %s1029_s0 }
  0x18   :  { %p884_p10 = pnand %p882_p9, %p879_p8 }
  0x1a   :  { %887 = shalt.err (!%p884_p10)
}
  0x1b   :  { %s888_s19 = scalar_lea.vmem %s22_s26, 128  ;;  %p893_p12 = scmp.lt.s32.totalorder %s22_s26, %s22_s26 }
  0x1c   :  { %p889_p11 = scmp.ne.s32.totalorder %s22_s26, %s888_s19  ;;  %p894_p13 = scmp.lt.s32.totalorder %s888_s19, %s888_s19 }
  0x1e   :  { %p895_p0 = por %p894_p13, %p893_p12 }
  0x20   :  { %p896_p1 = pnand %p895_p0, %p889_p11 }
  0x22   :  { %899 = shalt.err (!%p896_p1)
}
  0x23   :  { %24 = dma.hbm_to_vmem [thread:$0]  %s1029_s0, 128, %s22_s26, [#allocation4]  }
  0x24   :  { %s928_s21 = smov [#allocation7]   ;;  %s900_s25 = scalar_lea.hbm %s1031_s2, 8192 }
  0x25   :  { %s40_s22 = sshll.u32 %s928_s21, 4  ;;  %p901_p2 = scmp.ne.s32.totalorder %s1031_s2, %s900_s25  ;;  %s41_s22 = int_to_ptr.vmem [resolvable:$true] %s40_s22 }
  0x26   :  { %p904_p3 = scmp.lt.u32.totalorder %s900_s25, %s1031_s2 }
  0x28   :  { %p906_p4 = pnand %p904_p3, %p901_p2 }
  0x2a   :  { %909 = shalt.err (!%p906_p4)
}
  0x2b   :  { %s910_s7 = scalar_lea.vmem %s41_s22, 8192  ;;  %p915_p6 = scmp.lt.s32.totalorder %s41_s22, %s41_s22 }
  0x2c   :  { %p911_p5 = scmp.ne.s32.totalorder %s41_s22, %s910_s7  ;;  %p916_p7 = scmp.lt.s32.totalorder %s910_s7, %s910_s7 }
  0x2e   :  { %p917_p8 = por %p916_p7, %p915_p6 }
  0x30   :  { %p918_p9 = pnand %p917_p8, %p911_p5 }
  0x32   :  { %921 = shalt.err (!%p918_p9)
}
  0x33   :  { %s929_s0 = smov 256   ;;  %s930_s26 = smov 16  }
  0x34   :  { %46 = dma.hbm_to_vmem [thread:$0]  %s1031_s2, 8192, %s41_s22, [#allocation6], %s929_s0, %s929_s0, %s930_s26  }
  0x35   :  { %922 = dma.done.wait [#allocation4], 128  }
  0x36   :  { %923 = vsyncadd [#allocation4], 4294967168 }
  0x37   :  { %924 = dma.done.wait [#allocation6], 8320  }
  0x38   :  { %925 = vsyncadd [#allocation6], 4294958976  ;;  %v931_v1 = vmov 0   ;;  %v65_v2 = vld [vmem:[#allocation5] sm:$0xff]  ;;  %vm87_vm0 = vcmask 1043456   ;;  %v63_v3 = vld [vmem:[#allocation3] sm:$0xff] }
  0x39   :  { %126 = vmatprep.mubr.bf16.mxu0 %v931_v1  ;;  %v684_v4 = vcombine.high %v65_v2, %v65_v2  ;;  %v683_v5 = vcombine.low %v65_v2, %v65_v2  ;;  %v760_v6 = vld [vmem:[#allocation7 + $0x4] ss:$16 sps:$4 sm:$0xff]   ;;  %v762_v7 = vld [vmem:[#allocation7] ss:$16 sps:$4 sm:$0xff]   ;;  %v64_v10 = vpack.c.bf16 %v63_v3, %v63_v3  ;;  %vm83_vm1 = vcmask 64512  }
  0x3a   :  { %v763_v8 = vld [vmem:[#allocation7 + $0x24] ss:$16 sps:$4 sm:$0xff]   ;;  %345 = vmatprep.subr.bf16.mxu1 %v760_v6  ;;  %v765_v11 = vld [vmem:[#allocation7 + $0x20] ss:$16 sps:$4 sm:$0xff]   ;;  %v808_v40 = vld [vmem:[#allocation7 + $0x8] ss:$16 sps:$4 sm:$0xff]  }
  0x3b   :  { %685 = vmatprep.subr.msk.bf16.mxu0 %vm87_vm0, %v684_v4  ;;  %v89_v9 = vsel %vm87_vm0, %v683_v5, 0  ;;  %346 = vmatpush1.bf16.msra.mxu1 %v762_v7  ;;  %v766_v12 = vld [vmem:[#allocation7 + $0x44] ss:$16 sps:$4 sm:$0xff]   ;;  %v768_v13 = vld [vmem:[#allocation7 + $0x40] ss:$16 sps:$4 sm:$0xff]   ;;  %v68_v4 = vlaneseq  ;;  %vm675_vm2 = vcmask 7168  }
  0x3c   :  { %95 = vmatpush1.bf16.msra.mxu0 %v89_v9  ;;  %347 = vmatprep.subr.bf16.mxu1 %v763_v8  ;;  %v769_v14 = vld [vmem:[#allocation7 + $0x64] ss:$16 sps:$4 sm:$0xff]   ;;  %v771_v15 = vld [vmem:[#allocation7 + $0x60] ss:$16 sps:$4 sm:$0xff]   ;;  %v810_v41 = vld [vmem:[#allocation7 + $0xc] ss:$16 sps:$4 sm:$0xff]  }
  0x3d   :  { %v772_v16 = vld [vmem:[#allocation7 + $0x84] ss:$16 sps:$4 sm:$0xff]   ;;  %v774_v17 = vld [vmem:[#allocation7 + $0x80] ss:$16 sps:$4 sm:$0xff]   ;;  %v813_v42 = vld [vmem:[#allocation7 + $0x2c] ss:$16 sps:$4 sm:$0xff]   ;;  %596 = vmatprep.subr.bf16.mxu0 %v810_v41 }
  0x3e   :  { %v775_v18 = vld [vmem:[#allocation7 + $0xa4] ss:$16 sps:$4 sm:$0xff]   ;;  %v777_v19 = vld [vmem:[#allocation7 + $0xa0] ss:$16 sps:$4 sm:$0xff]   ;;  %v811_v43 = vld [vmem:[#allocation7 + $0x28] ss:$16 sps:$4 sm:$0xff]  }
  0x3f   :  { %686 = vmatmul.mubr.msk.bf16.vlgmr.msra.gmra.mrb[0].mxu0 %vm83_vm1, %v64_v10  ;;  %348 = vmatpush1.bf16.msra.mxu1 %v765_v11  ;;  %v778_v20 = vld [vmem:[#allocation7 + $0xc4] ss:$16 sps:$4 sm:$0xff]   ;;  %v780_v21 = vld [vmem:[#allocation7 + $0xc0] ss:$16 sps:$4 sm:$0xff]   ;;  %v816_v44 = vld [vmem:[#allocation7 + $0x4c] ss:$16 sps:$4 sm:$0xff]  }
  0x40   :  { %349 = vmatprep.subr.bf16.mxu1 %v766_v12  ;;  %v781_v22 = vld [vmem:[#allocation7 + $0xe4] ss:$16 sps:$4 sm:$0xff]   ;;  %v783_v23 = vld [vmem:[#allocation7 + $0xe0] ss:$16 sps:$4 sm:$0xff]   ;;  %597 = vmatpush1.bf16.msra.mxu0 %v808_v40  ;;  %v814_v45 = vld [vmem:[#allocation7 + $0x48] ss:$16 sps:$4 sm:$0xff]  }
  0x41   :  { %v784_v24 = vld [vmem:[#allocation7 + $0x104] ss:$16 sps:$4 sm:$0xff]   ;;  %v786_v25 = vld [vmem:[#allocation7 + $0x100] ss:$16 sps:$4 sm:$0xff]   ;;  %598 = vmatprep.subr.bf16.mxu0 %v813_v42  ;;  %v819_v46 = vld [vmem:[#allocation7 + $0x6c] ss:$16 sps:$4 sm:$0xff]  }
  0x42   :  { %v787_v26 = vld [vmem:[#allocation7 + $0x124] ss:$16 sps:$4 sm:$0xff]   ;;  %v789_v27 = vld [vmem:[#allocation7 + $0x120] ss:$16 sps:$4 sm:$0xff]   ;;  %v817_v47 = vld [vmem:[#allocation7 + $0x68] ss:$16 sps:$4 sm:$0xff]  }
  0x43   :  { %350 = vmatpush1.bf16.msra.mxu1 %v768_v13  ;;  %v790_v28 = vld [vmem:[#allocation7 + $0x144] ss:$16 sps:$4 sm:$0xff]   ;;  %v792_v29 = vld [vmem:[#allocation7 + $0x140] ss:$16 sps:$4 sm:$0xff]   ;;  %v822_v48 = vld [vmem:[#allocation7 + $0x8c] ss:$16 sps:$4 sm:$0xff]  }
  0x44   :  { %351 = vmatprep.subr.bf16.mxu1 %v769_v14  ;;  %v793_v30 = vld [vmem:[#allocation7 + $0x164] ss:$16 sps:$4 sm:$0xff]   ;;  %v795_v31 = vld [vmem:[#allocation7 + $0x160] ss:$16 sps:$4 sm:$0xff]   ;;  %599 = vmatpush1.bf16.msra.mxu0 %v811_v43  ;;  %v820_v49 = vld [vmem:[#allocation7 + $0x88] ss:$16 sps:$4 sm:$0xff]  }
  0x45   :  { %v796_v32 = vld [vmem:[#allocation7 + $0x184] ss:$16 sps:$4 sm:$0xff]   ;;  %v798_v33 = vld [vmem:[#allocation7 + $0x180] ss:$16 sps:$4 sm:$0xff]   ;;  %600 = vmatprep.subr.bf16.mxu0 %v816_v44  ;;  %v825_v50 = vld [vmem:[#allocation7 + $0xac] ss:$16 sps:$4 sm:$0xff]  }
  0x46   :  { %v799_v34 = vld [vmem:[#allocation7 + $0x1a4] ss:$16 sps:$4 sm:$0xff]   ;;  %v801_v35 = vld [vmem:[#allocation7 + $0x1a0] ss:$16 sps:$4 sm:$0xff]   ;;  %v823_v51 = vld [vmem:[#allocation7 + $0xa8] ss:$16 sps:$4 sm:$0xff]  }
  0x47   :  { %352 = vmatpush1.bf16.msra.mxu1 %v771_v15  ;;  %v802_v36 = vld [vmem:[#allocation7 + $0x1c4] ss:$16 sps:$4 sm:$0xff]   ;;  %v804_v37 = vld [vmem:[#allocation7 + $0x1c0] ss:$16 sps:$4 sm:$0xff]   ;;  %v828_v52 = vld [vmem:[#allocation7 + $0xcc] ss:$16 sps:$4 sm:$0xff]  }
  0x48   :  { %353 = vmatprep.subr.bf16.mxu1 %v772_v16  ;;  %v805_v38 = vld [vmem:[#allocation7 + $0x1e4] ss:$16 sps:$4 sm:$0xff]   ;;  %v807_v39 = vld [vmem:[#allocation7 + $0x1e0] ss:$16 sps:$4 sm:$0xff]   ;;  %601 = vmatpush1.bf16.msra.mxu0 %v814_v45  ;;  %v826_v53 = vld [vmem:[#allocation7 + $0xc8] ss:$16 sps:$4 sm:$0xff]  }
  0x49   :  { %602 = vmatprep.subr.bf16.mxu0 %v819_v46  ;;  %v831_v54 = vld [vmem:[#allocation7 + $0xec] ss:$16 sps:$4 sm:$0xff]   ;;  %v829_v55 = vld [vmem:[#allocation7 + $0xe8] ss:$16 sps:$4 sm:$0xff]   ;;  %v69_v5 = vshrl.u32 %v68_v4, 7 }
  0x4a   :  { %v834_v56 = vld [vmem:[#allocation7 + $0x10c] ss:$16 sps:$4 sm:$0xff]   ;;  %v832_v57 = vld [vmem:[#allocation7 + $0x108] ss:$16 sps:$4 sm:$0xff]   ;;  %v424_v43 = vld [vmem:[%s1032_s3 + $0x4] sm:$0x3] }
  0x4b   :  { %354 = vmatpush1.bf16.msra.mxu1 %v774_v17  ;;  %v837_v58 = vld [vmem:[#allocation7 + $0x12c] ss:$16 sps:$4 sm:$0xff]   ;;  %v835_v59 = vld [vmem:[#allocation7 + $0x128] ss:$16 sps:$4 sm:$0xff]   ;;  %v1006_v6 = vsub.s32 0, %v69_v5  ;;  %v74_v8 = vsub.s32 1, %v69_v5 }
  0x4c   :  { %355 = vmatprep.subr.bf16.mxu1 %v775_v18  ;;  %603 = vmatpush1.bf16.msra.mxu0 %v817_v47  ;;  %v840_v60 = vld [vmem:[#allocation7 + $0x14c] ss:$16 sps:$4 sm:$0xff]   ;;  %v838_v61 = vld [vmem:[#allocation7 + $0x148] ss:$16 sps:$4 sm:$0xff]   ;;  %v650_v45 = vsub.s32 2, %v69_v5 }
  0x4d   :  { %604 = vmatprep.subr.bf16.mxu0 %v822_v48  ;;  %v843_v62 = vld [vmem:[#allocation7 + $0x16c] ss:$16 sps:$4 sm:$0xff]   ;;  %v841_v63 = vld [vmem:[#allocation7 + $0x168] ss:$16 sps:$4 sm:$0xff]   ;;  %v429_v46 = vrot.slane %v424_v43, %v1006_v6  ;;  %v433_v47 = vrot.slane %v424_v43, %v74_v8 }
  0x4e   :  { %v846_v0 = vld [vmem:[#allocation7 + $0x18c] ss:$16 sps:$4 sm:$0xff]   ;;  %v844_v1 = vld [vmem:[#allocation7 + $0x188] ss:$16 sps:$4 sm:$0xff]  }
  0x4f   :  { %356 = vmatpush1.bf16.msra.mxu1 %v777_v19  ;;  %v849_v2 = vld [vmem:[#allocation7 + $0x1ac] ss:$16 sps:$4 sm:$0xff]   ;;  %v847_v3 = vld [vmem:[#allocation7 + $0x1a8] ss:$16 sps:$4 sm:$0xff]  }
  0x50   :  { %357 = vmatprep.subr.bf16.mxu1 %v778_v20  ;;  %605 = vmatpush1.bf16.msra.mxu0 %v820_v49  ;;  %v66_v7 = vld [vmem:[%s1032_s3] sm:$0x3] }
  0x51   :  { %606 = vmatprep.subr.bf16.mxu0 %v825_v50  ;;  %v71_v9 = vrot.slane %v66_v7, %v1006_v6  ;;  %v75_v10 = vrot.slane %v66_v7, %v74_v8  ;;  %v641_v42 = vld [vmem:[%s1033_s4] sm:$0x3] }
  0x52   :  { %v642_v44 = vunpack.c.l.bf16 %v641_v42 }
  0x53   :  { %358 = vmatpush1.bf16.msra.mxu1 %v780_v21 }
  0x54   :  { %359 = vmatprep.subr.bf16.mxu1 %v781_v22  ;;  %607 = vmatpush1.bf16.msra.mxu0 %v823_v51  ;;  %v647_v48 = vrot.slane %v642_v44, %v1006_v6  ;;  %v651_v50 = vrot.slane %v642_v44, %v650_v45 }
  0x55   :  { %608 = vmatprep.subr.bf16.mxu0 %v828_v52 }
  0x57   :  { %360 = vmatpush1.bf16.msra.mxu1 %v783_v23  ;;  %v852_v23 = vld [vmem:[#allocation7 + $0x1cc] ss:$16 sps:$4 sm:$0xff]  }
  0x58   :  { %361 = vmatprep.subr.bf16.mxu1 %v784_v24  ;;  %609 = vmatpush1.bf16.msra.mxu0 %v826_v53  ;;  %v850_v24 = vld [vmem:[#allocation7 + $0x1c8] ss:$16 sps:$4 sm:$0xff]  }
  0x59   :  { %610 = vmatprep.subr.bf16.mxu0 %v831_v54 }
  0x5b   :  { %362 = vmatpush1.bf16.msra.mxu1 %v786_v25  ;;  %v855_v25 = vld [vmem:[#allocation7 + $0x1ec] ss:$16 sps:$4 sm:$0xff]  }
  0x5c   :  { %363 = vmatprep.subr.bf16.mxu1 %v787_v26  ;;  %611 = vmatpush1.bf16.msra.mxu0 %v829_v55  ;;  %v853_v26 = vld [vmem:[#allocation7 + $0x1e8] ss:$16 sps:$4 sm:$0xff]  }
  0x5d   :  { %612 = vmatprep.subr.bf16.mxu0 %v834_v56 }
  0x5f   :  { %364 = vmatpush1.bf16.msra.mxu1 %v789_v27  ;;  %v173_v27 = vld [vmem:[%s1032_s3 + $0x2] sm:$0x3] }
  0x60   :  { %365 = vmatprep.subr.bf16.mxu1 %v790_v28  ;;  %613 = vmatpush1.bf16.msra.mxu0 %v832_v57  ;;  %v178_v28 = vrot.slane %v173_v27, %v1006_v6  ;;  %v657_v57 = vrot.slane %v647_v48, %v1006_v6 }
  0x61   :  { %614 = vmatprep.subr.bf16.mxu0 %v837_v58 }
  0x63   :  { %366 = vmatpush1.bf16.msra.mxu1 %v792_v29  ;;  %v182_v29 = vrot.slane %v173_v27, %v74_v8 }
  0x64   :  { %367 = vmatprep.subr.bf16.mxu1 %v793_v30  ;;  %615 = vmatpush1.bf16.msra.mxu0 %v835_v59  ;;  %v661_v59 = vrot.slane %v651_v50, %v1006_v6 }
  0x65   :  { %616 = vmatprep.subr.bf16.mxu0 %v840_v60 }
  0x67   :  { %368 = vmatpush1.bf16.msra.mxu1 %v795_v31 }
  0x68   :  { %369 = vmatprep.subr.bf16.mxu1 %v796_v32  ;;  %617 = vmatpush1.bf16.msra.mxu0 %v838_v61 }
  0x69   :  { %618 = vmatprep.subr.bf16.mxu0 %v843_v62 }
  0x6b   :  { %370 = vmatpush1.bf16.msra.mxu1 %v798_v33 }
  0x6c   :  { %371 = vmatprep.subr.bf16.mxu1 %v799_v34  ;;  %619 = vmatpush1.bf16.msra.mxu0 %v841_v63 }
  0x6d   :  { %620 = vmatprep.subr.bf16.mxu0 %v846_v0 }
  0x6f   :  { %372 = vmatpush1.bf16.msra.mxu1 %v801_v35 }
  0x70   :  { %373 = vmatprep.subr.bf16.mxu1 %v802_v36  ;;  %621 = vmatpush1.bf16.msra.mxu0 %v844_v1  ;;  %v751_v1 = vld [vmem:[#allocation2] ss:$0 sm:$0xff] }
  0x71   :  { %622 = vmatprep.subr.bf16.mxu0 %v849_v2 }
  0x73   :  { %374 = vmatpush1.bf16.msra.mxu1 %v804_v37 }
  0x74   :  { %375 = vmatprep.subr.bf16.mxu1 %v805_v38  ;;  %623 = vmatpush1.bf16.msra.mxu0 %v847_v3 }
  0x75   :  { %624 = vmatprep.subr.bf16.mxu0 %v852_v23 }
  0x77   :  { %376 = vmatpush1.bf16.msra.mxu1 %v807_v39 }
  0x78   :  { %625 = vmatpush1.bf16.msra.mxu0 %v850_v24 }
  0x79   :  { %626 = vmatprep.subr.bf16.mxu0 %v855_v25 }
  0x7c   :  { %627 = vmatpush1.bf16.msra.mxu0 %v853_v26 }
 0x112   :  { %v128_v11 = vpop.f32.mrb[0].mxu0 }
 0x113   :  { %v129_v12 = vadd.f32 %v128_v11, %v71_v9  ;;  %v130_v13 = vpop.f32.mrb[1].mxu0 }
 0x114   :  { %v131_v14 = vadd.f32 %v130_v13, %v75_v10  ;;  %v132_v15 = vpop.f32.mrb[2].mxu0 }
 0x115   :  { %v135_v16 = vmul.f32 0.01, %v129_v12  ;;  %v133_v17 = vpop.f32.mrb[3].mxu0 }
 0x116   :  { %v136_v18 = vmul.f32 0.01, %v131_v14 }
 0x117   :  { %v137_v19 = vmax.f32 %v129_v12, %v135_v16 }
 0x118   :  { %v138_v20 = vmax.f32 %v131_v14, %v136_v18 }
 0x119   :  { %v139_v22 = vpack.c.bf16 %v137_v19, %v137_v19 }
 0x11a   :  { %v140_v21 = vpack.c.bf16 %v138_v20, %v138_v20 }
 0x11c   :  { %377 = vmatprep.mubr.bf16.mxu1 %v140_v21 }
 0x11d   :  { %378 = vmatmul.mubr.bf16.vlgmr.msra.gmra.mrb[0].mxu1 %v139_v22 }
 0x1f0   :  { %v379_v30 = vpop.f32.mrb[0].mxu1 }
 0x1f1   :  { %v380_v31 = vadd.f32 %v379_v30, %v178_v28  ;;  %v381_v32 = vpop.f32.mrb[1].mxu1 }
 0x1f2   :  { %v382_v33 = vadd.f32 %v381_v32, %v182_v29  ;;  %v383_v34 = vpop.f32.mrb[2].mxu1 }
 0x1f3   :  { %v386_v35 = vmul.f32 0.01, %v380_v31  ;;  %v384_v36 = vpop.f32.mrb[3].mxu1 }
 0x1f4   :  { %v387_v37 = vmul.f32 0.01, %v382_v33 }
 0x1f5   :  { %v388_v38 = vmax.f32 %v380_v31, %v386_v35 }
 0x1f6   :  { %v389_v39 = vmax.f32 %v382_v33, %v387_v37 }
 0x1f7   :  { %v390_v41 = vpack.c.bf16 %v388_v38, %v388_v38 }
 0x1f8   :  { %v391_v40 = vpack.c.bf16 %v389_v39, %v389_v39 }
 0x1fa   :  { %628 = vmatprep.mubr.bf16.mxu0 %v391_v40 }
 0x1fb   :  { %629 = vmatmul.mubr.bf16.vlgmr.msra.gmra.mrb[4].mxu0 %v390_v41 }
 0x2ce   :  { %v630_v49 = vpop.f32.mrb[4].mxu0 }
 0x2cf   :  { %v631_v51 = vadd.f32 %v630_v49, %v429_v46  ;;  %v632_v52 = vpop.f32.mrb[5].mxu0 }
 0x2d0   :  { %v633_v53 = vadd.f32 %v632_v52, %v433_v47  ;;  %v634_v54 = vpop.f32.mrb[6].mxu0 }
 0x2d1   :  { %v637_v55 = vmul.f32 0.01, %v631_v51  ;;  %v635_v56 = vpop.f32.mrb[7].mxu0 }
 0x2d2   :  { %v638_v58 = vmul.f32 0.01, %v633_v53 }
 0x2d3   :  { %v639_v60 = vmax.f32 %v631_v51, %v637_v55 }
 0x2d4   :  { %v640_v61 = vmax.f32 %v633_v53, %v638_v58 }
 0x2d5   :  { %v662_v62 = vmul.f32 %v657_v57, %v639_v60 }
 0x2d6   :  { %v663_v63 = vmul.f32 %v661_v59, %v640_v61 }
 0x2d8   :  { %v664_v0 = vadd.f32 %v663_v63, %v662_v62 }
 0x2da   :  { %665 = vadd.xlane.f32.xlu0 %v664_v0 }
 0x367   :  { %v666_v2 = vpop.xlane.xlu0 %665 }
 0x368   :  { %v674_v3 = vadd.f32 %v751_v1, %v666_v2 }
 0x36a   :  { %676 = vst.msk [vmem:[%s1035_s6] sm:$0xff] %vm675_vm2, %v674_v3 }
 0x36b   :  { %681 = vsyncpa [#allocation4], 1 }
 0x36c   :  { %682 = vsyncpa [#allocation6], 1 }

</bundles_post_ra>
